<compile_context>
chip_gen: v5e
topology: v5e:2x2
jax: 0.10.0
libtpu: 0.0.40
codegen_flags: <defaults>
</compile_context>

<pallas_src>
import functools

import jax
import jax.numpy as jnp
from jax.experimental import pallas as pl
from jax.experimental.pallas import tpu as pltpu

STATE_SPACE_SIZE = 32
ACTION_SPACE_SIZE = 8
HIDDEN1 = 128
HIDDEN2 = 64
TILE_B_DEFAULT = 2048   # amortizes ~0.35us/step overhead; sweep 1024-8192


def _round_up(n, m):
    return ((n + m - 1) // m) * m


def dqn_kernel(x_ref, w1_ref, b1_ref, w2_ref, b2_ref, w3_ref, b3_ref, o_ref):
    # Layer 1: Linear(state, 128) + ReLU.
    h1 = jnp.dot(x_ref[...], w1_ref[...], preferred_element_type=jnp.float32)
    h1 = jnp.maximum(h1 + b1_ref[...], 0.0)
    # Layer 2: Linear(128, 64) + ReLU.
    h2 = jnp.dot(h1, w2_ref[...], preferred_element_type=jnp.float32)
    h2 = jnp.maximum(h2 + b2_ref[...], 0.0)
    # Layer 3: Linear(64, 8)  -- output block is exactly 8 lanes wide.
    out = jnp.dot(h2, w3_ref[...], preferred_element_type=jnp.float32)
    o_ref[...] = (out + b3_ref[...]).astype(o_ref.dtype)


@functools.partial(jax.jit, static_argnames=("tile_b",))
def dqn_forward(x, params, *, tile_b=TILE_B_DEFAULT):
    """x: (B, STATE_SPACE_SIZE) float32 -> (B, ACTION_SPACE_SIZE) float32."""
    w1, b1, w2, b2, w3, b3 = params
    B = x.shape[0]

    # Tile: multiple of 8, capped at tile_b, and sized so the grid has >= 2
    # steps whenever B allows it (keeps both v7x TensorCores busy).
    tb = min(tile_b, max(8, _round_up(pl.cdiv(B, 2), 8)))
    grid = (pl.cdiv(B, tb),)

    resident = lambda i: (0, 0)   # weights/biases: same block every grid step

    out = pl.pallas_call(
        dqn_kernel,
        out_shape=jax.ShapeDtypeStruct((B, ACTION_SPACE_SIZE), jnp.float32),
        grid_spec=pltpu.PrefetchScalarGridSpec(
            num_scalar_prefetch=0,
            grid=grid,
            in_specs=[
                pl.BlockSpec((tb, STATE_SPACE_SIZE), lambda i: (i, 0)),
                pl.BlockSpec((STATE_SPACE_SIZE, HIDDEN1), resident),
                pl.BlockSpec((1, HIDDEN1), resident),
                pl.BlockSpec((HIDDEN1, HIDDEN2), resident),
                pl.BlockSpec((1, HIDDEN2), resident),
                pl.BlockSpec((HIDDEN2, ACTION_SPACE_SIZE), resident),
                pl.BlockSpec((1, ACTION_SPACE_SIZE), resident),
            ],
            out_specs=pl.BlockSpec((tb, ACTION_SPACE_SIZE), lambda i: (i, 0)),
        ),
        compiler_params=pltpu.CompilerParams(
            dimension_semantics=("parallel",),
        ),
    )(x, w1, b1, w2, b2, w3, b3)
    return out


def init_params(key):
    """Deterministic synthetic parameters matching the PyTorch module's shapes.

    PyTorch Linear weights are (out, in); stored here as (in, out) so the
    kernel computes x @ W.  Biases are kept 2-D (1, out), all f32.
    """
    k1, k2, k3, k4, k5, k6 = jax.random.split(key, 6)
    scale = 0.05
    w1 = scale * jax.random.normal(k1, (STATE_SPACE_SIZE, HIDDEN1), jnp.float32)
    b1 = scale * jax.random.normal(k2, (1, HIDDEN1), jnp.float32)
    w2 = scale * jax.random.normal(k3, (HIDDEN1, HIDDEN2), jnp.float32)
    b2 = scale * jax.random.normal(k4, (1, HIDDEN2), jnp.float32)
    w3 = scale * jax.random.normal(k5, (HIDDEN2, ACTION_SPACE_SIZE), jnp.float32)
    b3 = scale * jax.random.normal(k6, (1, ACTION_SPACE_SIZE), jnp.float32)
    return (w1, b1, w2, b2, w3, b3)


def dqn_reference_f32(x, params):
    """Exact f32 reference of the original PyTorch module."""
    w1, b1, w2, b2, w3, b3 = params
    h1 = jnp.maximum(x @ w1 + b1, 0.0)
    h2 = jnp.maximum(h1 @ w2 + b2, 0.0)
    return h2 @ w3 + b3


if __name__ == "__main__":
    key = jax.random.PRNGKey(0)
    pkey, xkey = jax.random.split(key)
    params = init_params(pkey)

    batch = 2
    x = jax.random.normal(xkey, (batch, STATE_SPACE_SIZE), jnp.float32)

    out = jax.block_until_ready(dqn_forward(x, params))
    assert out.shape == (batch, ACTION_SPACE_SIZE)
    ref = dqn_reference_f32(x, params)
    assert jnp.allclose(out, ref, atol=1e-2, rtol=1e-2)

    # Non-tile-aligned larger batch: exercises the ragged multi-step grid.
    xb = jax.random.normal(jax.random.PRNGKey(1), (1037, STATE_SPACE_SIZE),
                           jnp.float32)
    outb = jax.block_until_ready(dqn_forward(xb, params))
    assert outb.shape == (1037, ACTION_SPACE_SIZE)
    assert jnp.allclose(outb, dqn_reference_f32(xb, params),
                        atol=1e-2, rtol=1e-2)

    print("KERNEL_OK")
</pallas_src>

<mosaic_0001>
module attributes {stable_mosaic.version = 11 : i64} {
  func.func @dqn_kernel(%arg0: i32, %arg1: memref<8x32xf32, #tpu.memory_space<vmem>>, %arg2: memref<32x128xf32, #tpu.memory_space<vmem>>, %arg3: memref<1x128xf32, #tpu.memory_space<vmem>>, %arg4: memref<128x64xf32, #tpu.memory_space<vmem>>, %arg5: memref<1x64xf32, #tpu.memory_space<vmem>>, %arg6: memref<64x8xf32, #tpu.memory_space<vmem>>, %arg7: memref<1x8xf32, #tpu.memory_space<vmem>>, %arg8: memref<8x8xf32, #tpu.memory_space<vmem>>) attributes {dimension_semantics = [#tpu.dimension_semantics<parallel>], iteration_bounds = array<i64: 1>, scalar_prefetch = 0 : i64, scratch_operands = 0 : i64, tpu.core_type = #tpu.core_type<tc>, window_params = [{transform_indices = @transform_0, window_bounds = array<i64: 8, 32>}, {pipeline_mode = #tpu.pipeline_mode<synchronous>, transform_indices = @transform_1, window_bounds = array<i64: 32, 128>}, {pipeline_mode = #tpu.pipeline_mode<synchronous>, transform_indices = @transform_2, window_bounds = array<i64: 1, 128>}, {pipeline_mode = #tpu.pipeline_mode<synchronous>, transform_indices = @transform_3, window_bounds = array<i64: 128, 64>}, {pipeline_mode = #tpu.pipeline_mode<synchronous>, transform_indices = @transform_4, window_bounds = array<i64: 1, 64>}, {pipeline_mode = #tpu.pipeline_mode<synchronous>, transform_indices = @transform_5, window_bounds = array<i64: 64, 8>}, {pipeline_mode = #tpu.pipeline_mode<synchronous>, transform_indices = @transform_6, window_bounds = array<i64: 1, 8>}, {transform_indices = @transform_7, window_bounds = array<i64: 8, 8>}]} {
    %c0 = arith.constant 0 : index
    %c0_0 = arith.constant 0 : index
    %0 = vector.load %arg1[%c0, %c0_0] : memref<8x32xf32, #tpu.memory_space<vmem>>, vector<8x32xf32>
    %c0_1 = arith.constant 0 : index
    %c0_2 = arith.constant 0 : index
    %1 = vector.load %arg2[%c0_1, %c0_2] : memref<32x128xf32, #tpu.memory_space<vmem>>, vector<32x128xf32>
    %cst = arith.constant dense<0.000000e+00> : vector<8x128xf32>
    %2 = tpu.matmul %0, %1, %cst {dimension_numbers = #tpu.dot_dimension_numbers<[1], [0], [0], [1], [0, 0, 1, 1], [], []>} : vector<8x32xf32>, vector<32x128xf32>, vector<8x128xf32> -> vector<8x128xf32>
    %c0_3 = arith.constant 0 : index
    %c0_4 = arith.constant 0 : index
    %3 = vector.load %arg3[%c0_3, %c0_4] : memref<1x128xf32, #tpu.memory_space<vmem>>, vector<1x128xf32>
    %4 = vector.broadcast %3 : vector<1x128xf32> to vector<8x128xf32>
    %5 = arith.addf %2, %4 : vector<8x128xf32>
    %cst_5 = arith.constant 0.000000e+00 : f32
    %6 = vector.broadcast %cst_5 : f32 to vector<8x128xf32>
    %7 = arith.maximumf %5, %6 : vector<8x128xf32>
    %c0_6 = arith.constant 0 : index
    %c0_7 = arith.constant 0 : index
    %8 = vector.load %arg4[%c0_6, %c0_7] : memref<128x64xf32, #tpu.memory_space<vmem>>, vector<128x64xf32>
    %cst_8 = arith.constant dense<0.000000e+00> : vector<8x64xf32>
    %9 = tpu.matmul %7, %8, %cst_8 {dimension_numbers = #tpu.dot_dimension_numbers<[1], [0], [0], [1], [0, 0, 1, 1], [], []>} : vector<8x128xf32>, vector<128x64xf32>, vector<8x64xf32> -> vector<8x64xf32>
    %c0_9 = arith.constant 0 : index
    %c0_10 = arith.constant 0 : index
    %10 = vector.load %arg5[%c0_9, %c0_10] : memref<1x64xf32, #tpu.memory_space<vmem>>, vector<1x64xf32>
    %11 = vector.broadcast %10 : vector<1x64xf32> to vector<8x64xf32>
    %12 = arith.addf %9, %11 : vector<8x64xf32>
    %cst_11 = arith.constant 0.000000e+00 : f32
    %13 = vector.broadcast %cst_11 : f32 to vector<8x64xf32>
    %14 = arith.maximumf %12, %13 : vector<8x64xf32>
    %c0_12 = arith.constant 0 : index
    %c0_13 = arith.constant 0 : index
    %15 = vector.load %arg6[%c0_12, %c0_13] : memref<64x8xf32, #tpu.memory_space<vmem>>, vector<64x8xf32>
    %cst_14 = arith.constant dense<0.000000e+00> : vector<8x8xf32>
    %16 = tpu.matmul %14, %15, %cst_14 {dimension_numbers = #tpu.dot_dimension_numbers<[1], [0], [0], [1], [0, 0, 1, 1], [], []>} : vector<8x64xf32>, vector<64x8xf32>, vector<8x8xf32> -> vector<8x8xf32>
    %c0_15 = arith.constant 0 : index
    %c0_16 = arith.constant 0 : index
    %17 = vector.load %arg7[%c0_15, %c0_16] : memref<1x8xf32, #tpu.memory_space<vmem>>, vector<1x8xf32>
    %18 = vector.broadcast %17 : vector<1x8xf32> to vector<8x8xf32>
    %19 = arith.addf %16, %18 : vector<8x8xf32>
    %c0_17 = arith.constant 0 : index
    %c0_18 = arith.constant 0 : index
    %20 = vector.load %arg8[%c0_17, %c0_18] : memref<8x8xf32, #tpu.memory_space<vmem>>, vector<8x8xf32>
    tpu.vector_store %arg8[%c0_17, %c0_18], %19 {strides = array<i32>} : memref<8x8xf32, #tpu.memory_space<vmem>>, vector<8x8xf32>,
    return
  }
  func.func @transform_0(%arg0: i32) -> (i32, i32) {
    %c0_i32 = arith.constant 0 : i32
    %c0_i32_0 = arith.constant 0 : i32
    return %arg0, %c0_i32 : i32, i32
  }
  func.func @transform_1(%arg0: i32) -> (i32, i32) {
    %c0_i32 = arith.constant 0 : i32
    %c0_i32_0 = arith.constant 0 : i32
    %c0_i32_1 = arith.constant 0 : i32
    return %c0_i32, %c0_i32_0 : i32, i32
  }
  func.func @transform_2(%arg0: i32) -> (i32, i32) {
    %c0_i32 = arith.constant 0 : i32
    %c0_i32_0 = arith.constant 0 : i32
    %c0_i32_1 = arith.constant 0 : i32
    return %c0_i32, %c0_i32_0 : i32, i32
  }
  func.func @transform_3(%arg0: i32) -> (i32, i32) {
    %c0_i32 = arith.constant 0 : i32
    %c0_i32_0 = arith.constant 0 : i32
    %c0_i32_1 = arith.constant 0 : i32
    return %c0_i32, %c0_i32_0 : i32, i32
  }
  func.func @transform_4(%arg0: i32) -> (i32, i32) {
    %c0_i32 = arith.constant 0 : i32
    %c0_i32_0 = arith.constant 0 : i32
    %c0_i32_1 = arith.constant 0 : i32
    return %c0_i32, %c0_i32_0 : i32, i32
  }
  func.func @transform_5(%arg0: i32) -> (i32, i32) {
    %c0_i32 = arith.constant 0 : i32
    %c0_i32_0 = arith.constant 0 : i32
    %c0_i32_1 = arith.constant 0 : i32
    return %c0_i32, %c0_i32_0 : i32, i32
  }
  func.func @transform_6(%arg0: i32) -> (i32, i32) {
    %c0_i32 = arith.constant 0 : i32
    %c0_i32_0 = arith.constant 0 : i32
    %c0_i32_1 = arith.constant 0 : i32
    return %c0_i32, %c0_i32_0 : i32, i32
  }
  func.func @transform_7(%arg0: i32) -> (i32, i32) {
    %c0_i32 = arith.constant 0 : i32
    %c0_i32_0 = arith.constant 0 : i32
    return %arg0, %c0_i32 : i32, i32
  }
}

</mosaic_0001>

<bundles_post_ra>
// kernel: dqn_forward.1
= control target key start
LH: loop header
LB: loop body
LE: loop exit
PB: predicated region body
PF: predicated region fallthrough
CT: control target
= control target key end

     0   :  { %12 = vsyncpa [#allocation3], 0  ;;  %vm36_vm0 = vcmask 261120   ;;  %vm114_vm1 = vcmask 523264   ;;  %vm138_vm2 = vcmask 64512   ;;  %s334_s0 = inlined_call_operand.vmem [shape: f32[2,32], index: 0, kind: input, shape index: {}]   ;;  %s335_s1 = inlined_call_operand.vmem [shape: f32[32,128], index: 1, kind: input, shape index: {}]   ;;  %s336_s2 = inlined_call_operand.vmem [shape: f32[1,128], index: 2, kind: input, shape index: {}]   ;;  %s337_s3 = inlined_call_operand.vmem [shape: f32[128,64], index: 3, kind: input, shape index: {}]   ;;  %s338_s4 = inlined_call_operand.vmem [shape: f32[1,64], index: 4, kind: input, shape index: {}]   ;;  %s339_s5 = inlined_call_operand.vmem [shape: f32[64,8], index: 5, kind: input, shape index: {}]   ;;  %s340_s6 = inlined_call_operand.vmem [shape: f32[1,8], index: 6, kind: input, shape index: {}]   ;;  %s341_s7 = inlined_call_operand.hbm [shape: f32[2,8], index: 7, kind: output, shape index: {}]  }
   0x1   :  { %v31_v0 = vld [vmem:[%s335_s1 + $0x18] sm:$0xff]  ;;  %v30_v1 = vld [vmem:[%s335_s1 + $0x10] sm:$0xff]  ;;  %v29_v2 = vld [vmem:[%s335_s1 + $0x8] sm:$0xff] }
   0x2   :  { %52 = vmatpush.msra.mxu0 %v31_v0  ;;  %v76_v3 = vld [vmem:[%s337_s3 + $0x78] sm:$0xff]  ;;  %v75_v4 = vld [vmem:[%s337_s3 + $0x70] sm:$0xff]  ;;  %v28_v5 = vld [vmem:[%s335_s1] sm:$0xff] }
   0x3   :  { %81 = vmatpush.msra.mxu1 %v76_v3  ;;  %v74_v6 = vld [vmem:[%s337_s3 + $0x68] sm:$0xff]  ;;  %v27_v7 = vld [vmem:[%s334_s0] sm:$0xff]  ;;  %v72_v9 = vld [vmem:[%s337_s3 + $0x58] sm:$0xff] }
   0x4   :  { %53 = vmatpush.msra.mxu0 %v30_v1  ;;  %v73_v8 = vld [vmem:[%s337_s3 + $0x60] sm:$0xff]  ;;  %v71_v10 = vld [vmem:[%s337_s3 + $0x50] sm:$0xff]  ;;  %v70_v11 = vld [vmem:[%s337_s3 + $0x48] sm:$0xff] }
   0x5   :  { %82 = vmatpush.msra.mxu1 %v75_v4  ;;  %v69_v12 = vld [vmem:[%s337_s3 + $0x40] sm:$0xff]  ;;  %v68_v13 = vld [vmem:[%s337_s3 + $0x38] sm:$0xff]  ;;  %v67_v14 = vld [vmem:[%s337_s3 + $0x30] sm:$0xff] }
   0x6   :  { %54 = vmatpush.msra.mxu0 %v29_v2  ;;  %v66_v15 = vld [vmem:[%s337_s3 + $0x28] sm:$0xff]  ;;  %v65_v16 = vld [vmem:[%s337_s3 + $0x20] sm:$0xff]  ;;  %v64_v17 = vld [vmem:[%s337_s3 + $0x18] sm:$0xff] }
   0x7   :  { %83 = vmatpush.msra.mxu1 %v74_v6  ;;  %v63_v18 = vld [vmem:[%s337_s3 + $0x10] sm:$0xff]  ;;  %v62_v19 = vld [vmem:[%s337_s3 + $0x8] sm:$0xff]  ;;  %v61_v20 = vld [vmem:[%s337_s3] sm:$0xff] }
   0x8   :  { %55 = vmatpush.msra.mxu0 %v28_v5  ;;  %v109_v21 = vld [vmem:[%s339_s5 + $0x38] sm:$0xff]  ;;  %v108_v22 = vld [vmem:[%s339_s5 + $0x30] sm:$0xff]  ;;  %v107_v23 = vld [vmem:[%s339_s5 + $0x28] sm:$0xff] }
   0x9   :  { %158 = vmatmul.msk.f32.vlgmr.msra.gmra.mxu0 %vm36_vm0, %v27_v7  ;;  %84 = vmatpush.msra.mxu1 %v73_v8  ;;  %v106_v24 = vld [vmem:[%s339_s5 + $0x20] sm:$0xff]  ;;  %v105_v25 = vld [vmem:[%s339_s5 + $0x18] sm:$0xff]  ;;  %v104_v30 = vld [vmem:[%s339_s5 + $0x10] sm:$0xff] }
   0xa   :  { %126 = vmatpush.msra.mxu2 %v109_v21  ;;  %v163_v26 = vld [vmem:[%s336_s2] ss:$0 sm:$0xff]  ;;  %v103_v31 = vld [vmem:[%s339_s5 + $0x8] sm:$0xff] }
   0xb   :  { %85 = vmatpush.msra.mxu1 %v72_v9  ;;  %v102_v32 = vld [vmem:[%s339_s5] sm:$0xff] }
   0xc   :  { %127 = vmatpush.msra.mxu2 %v108_v22  ;;  %v164_v33 = vld [vmem:[%s338_s4] ss:$0 sm:$0xff] }
   0xd   :  { %86 = vmatpush.msra.mxu1 %v71_v10  ;;  %v165_v37 = vld [vmem:[%s340_s6] ss:$0 sm:$0xff] }
   0xe   :  { %128 = vmatpush.msra.mxu2 %v107_v23 }
   0xf   :  { %87 = vmatpush.msra.mxu1 %v70_v11 }
  0x10   :  { %129 = vmatpush.msra.mxu2 %v106_v24 }
  0x11   :  { %88 = vmatpush.msra.mxu1 %v69_v12 }
  0x12   :  { %130 = vmatpush.msra.mxu2 %v105_v25 }
  0x13   :  { %89 = vmatpush.msra.mxu1 %v68_v13 }
  0x14   :  { %131 = vmatpush.msra.mxu2 %v104_v30 }
  0x15   :  { %90 = vmatpush.msra.mxu1 %v67_v14 }
  0x16   :  { %132 = vmatpush.msra.mxu2 %v103_v31 }
  0x17   :  { %91 = vmatpush.msra.mxu1 %v66_v15 }
  0x18   :  { %133 = vmatpush.msra.mxu2 %v102_v32 }
  0x19   :  { %92 = vmatpush.msra.mxu1 %v65_v16 }
  0x1b   :  { %93 = vmatpush.msra.mxu1 %v64_v17 }
  0x1d   :  { %94 = vmatpush.msra.mxu1 %v63_v18 }
  0x1f   :  { %95 = vmatpush.msra.mxu1 %v62_v19 }
  0x21   :  { %96 = vmatpush.msra.mxu1 %v61_v20 }
  0x86   :  { %v57_v27 = vpop.f32.mrf.mxu0 }
  0x87   :  { %v58_v28 = vadd.f32 %v163_v26, %v57_v27 }
  0x89   :  { %v60_v29 = vmax.f32 %v58_v28, 0.0 }
  0x8b   :  { %97 = vmatmul.f32.vlgmr.msra.gmra.mxu1 %v60_v29 }
 0x108   :  { %v98_v34 = vpop.f32.mrf.mxu1 }
 0x109   :  { %v99_v35 = vadd.f32 %v164_v33, %v98_v34 }
 0x10b   :  { %v101_v36 = vmax.f32 %v99_v35, 0.0 }
 0x10d   :  { %159 = vmatmul.msk.f32.vlgmr.msra.gmra.mxu2 %vm114_vm1, %v101_v36 }
 0x190   :  { %v135_v38 = vpop.f32.mrf.mxu2 }
 0x191   :  { %v136_v39 = vadd.f32 %v165_v37, %v135_v38 }
 0x193   :  { %139 = vst.msk [vmem:[#allocation2] sm:$0xff] %vm138_vm2, %v136_v39 }
 0x194   :  { %143 = vsyncadd [#allocation3], 96  ;;  %s146_s14 = sshll.u32 %s341_s7, 4  ;;  %s192_s15 = smov [#allocation2]   ;;  %s147_s14 = int_to_ptr.hbm [resolvable:$true] %s146_s14 }
 0x195   :  { %s144_s4 = sshll.u32 %s192_s15, 4  ;;  %s193_s16 = smov 32   ;;  %s145_s4 = int_to_ptr.vmem [resolvable:$true] %s144_s4 }
 0x196   :  { %s194_s17 = smov 2  }
 0x197   :  { %152 = dma.vmem_to_hbm [thread:$0]  %s145_s4, 32, %s147_s14, [#allocation3], %s193_s16, %s193_s16, %s194_s17  }
 0x198   :  { %190 = dma.done.wait [#allocation3], 128  }
 0x199   :  { %191 = vsyncadd [#allocation3], 4294967168 }
 0x19a   :  { %157 = vsyncpa [#allocation3], 1 }

</bundles_post_ra>
